<compile_context>
chip_gen: v7x
topology: tpu7x:2x2x1
jax: 0.10.0
libtpu: 0.0.40
codegen_flags: <defaults>
</compile_context>

<pallas_src>
import functools

import jax
import jax.numpy as jnp
from jax.experimental import pallas as pl
from jax.experimental.pallas import tpu as pltpu

FC1_DIMS = 256
FC2_DIMS = 256


def _round_up(x, m):
    return ((x + m - 1) // m) * m


def _actor_critic_kernel(x_ref, w1_ref, b1_ref, w2_ref, b2_ref,
                         wh_ref, bh_ref, out_ref):
    wdt = w1_ref.dtype           # weight dtype (f32 or bf16)
    x = x_ref[...]
    if x.dtype != wdt:
        x = x.astype(wdt)        # bf16 feeds the MXU; accumulation stays f32

    # fc1 + ReLU  (MXU matmul, f32 accumulate; bias-add / ReLU in f32 on VPU)
    h1 = jnp.dot(x, w1_ref[...], preferred_element_type=jnp.float32)
    h1 = jnp.maximum(h1 + b1_ref[...], 0.0)

    # fc2 + ReLU
    h1c = h1.astype(wdt) if wdt != jnp.float32 else h1
    h2 = jnp.dot(h1c, w2_ref[...], preferred_element_type=jnp.float32)
    h2 = jnp.maximum(h2 + b2_ref[...], 0.0)

    # fused heads: fc2_dims -> [pi | v | zero-pad] in one MXU dot.
    # Output block is 128-lane dense -> unmasked vector stores.
    h2c = h2.astype(wdt) if wdt != jnp.float32 else h2
    out = jnp.dot(h2c, wh_ref[...], preferred_element_type=jnp.float32)
    out_ref[...] = (out + bh_ref[...]).astype(out_ref.dtype)


@functools.partial(jax.jit, static_argnames=("block_b",))
def actor_critic_forward(state, params, *, block_b=512):
    """Fused forward. state: [B, D_in] f32 -> (pi: [B, n_actions], v: [B, 1])."""
    w1, b1, w2, b2, wpi, bpi, wv, bv = params
    B, D_in = state.shape
    n_actions = wpi.shape[1]
    assert block_b % 8 == 0, "batch tile must be a multiple of the 8-row sublane"

    # Fuse pi and v head params into one lane-dense [fc2, head_pad] weight.
    n_head = n_actions + 1
    head_pad = _round_up(n_head, 128)
    w_head = jnp.concatenate([wpi, wv], axis=1)
    w_head = jnp.pad(w_head, ((0, 0), (0, head_pad - n_head)))
    b_head = jnp.concatenate([bpi, bv], axis=1)
    b_head = jnp.pad(b_head, ((0, 0), (0, head_pad - n_head)))

    # Batch tile: as large as requested, but never larger than the (padded)
    # batch; always a multiple of 8 to satisfy the (8, 128) tiling constraint.
    TB = min(block_b, _round_up(B, 8))
    B_pad = _round_up(B, TB)
    if B_pad != B:
        state = jnp.pad(state, ((0, B_pad - B), (0, 0)))
    grid = (B_pad // TB,)

    batch_spec = lambda n: pl.BlockSpec((TB, n), lambda i: (i, 0))
    resident = lambda a: pl.BlockSpec(a.shape, lambda i: (0, 0))

    out = pl.pallas_call(
        _actor_critic_kernel,
        out_shape=jax.ShapeDtypeStruct((B_pad, head_pad), jnp.float32),
        grid=grid,
        in_specs=[
            batch_spec(D_in),      # state: pipelined tile per grid step
            resident(w1),          # weights / biases: constant index_map ->
            resident(b1),          #   stay VMEM-resident across grid steps
            resident(w2),
            resident(b2),
            resident(w_head),
            resident(b_head),
        ],
        out_specs=batch_spec(head_pad),
        compiler_params=pltpu.CompilerParams(
            dimension_semantics=("parallel",)),   # v7x: split batch over 2 TCs
    )(state, w1, b1, w2, b2, w_head, b_head)

    pi = out[:B, :n_actions]
    v = out[:B, n_actions:n_actions + 1]
    return pi, v


def init_params(key, input_dims, n_actions, fc1_dims=FC1_DIMS,
                fc2_dims=FC2_DIMS, weight_dtype=jnp.float32):
    """Deterministic synthetic params (shapes match the PyTorch module).

    Weights stored as [in, out] (nn.Linear.weight transposed); biases as
    (1, out) f32.
    """
    d_in = input_dims[0]
    ks = jax.random.split(key, 8)

    def u(k, shape, fan_in):
        bound = 1.0 / jnp.sqrt(jnp.float32(fan_in))
        return jax.random.uniform(k, shape, jnp.float32, -bound, bound)

    w1 = u(ks[0], (d_in, fc1_dims), d_in).astype(weight_dtype)            # fc1.weight.T
    b1 = u(ks[1], (1, fc1_dims), d_in)                                    # fc1.bias
    w2 = u(ks[2], (fc1_dims, fc2_dims), fc1_dims).astype(weight_dtype)    # fc2.weight.T
    b2 = u(ks[3], (1, fc2_dims), fc1_dims)                                # fc2.bias
    wpi = u(ks[4], (fc2_dims, n_actions), fc2_dims).astype(weight_dtype)  # pi.weight.T
    bpi = u(ks[5], (1, n_actions), fc2_dims)                              # pi.bias
    wv = u(ks[6], (fc2_dims, 1), fc2_dims).astype(weight_dtype)           # v.weight.T
    bv = u(ks[7], (1, 1), fc2_dims)                                       # v.bias
    return (w1, b1, w2, b2, wpi, bpi, wv, bv)


def reference_forward(state, params):
    """Pure-JAX reference with the same cast sequence as the kernel."""
    w1, b1, w2, b2, wpi, bpi, wv, bv = params
    wdt = w1.dtype
    x = state.astype(wdt) if state.dtype != wdt else state
    h1 = jnp.maximum(
        jnp.dot(x, w1, preferred_element_type=jnp.float32) + b1, 0.0)
    h1c = h1.astype(wdt) if wdt != jnp.float32 else h1
    h2 = jnp.maximum(
        jnp.dot(h1c, w2, preferred_element_type=jnp.float32) + b2, 0.0)
    h2c = h2.astype(wdt) if wdt != jnp.float32 else h2
    pi = jnp.dot(h2c, wpi, preferred_element_type=jnp.float32) + bpi
    v = jnp.dot(h2c, wv, preferred_element_type=jnp.float32) + bv
    return pi, v


if __name__ == "__main__":
    key = jax.random.PRNGKey(0)
    k_param, k_state, k_state2 = jax.random.split(key, 3)

    B = 8
    input_dims = (16,)
    n_actions = 4

    # --- f32 weights, single-tile grid, tight tolerance -------------------
    params = init_params(k_param, input_dims, n_actions)
    state = jax.random.normal(k_state, (B, input_dims[0]), dtype=jnp.float32)

    pi, v = actor_critic_forward(state, params)
    (pi, v) = jax.block_until_ready((pi, v))
    pi_ref, v_ref = reference_forward(state, params)
    assert pi.shape == (B, n_actions) and v.shape == (B, 1), (pi.shape, v.shape)
    assert jnp.allclose(pi, pi_ref, atol=1e-5, rtol=1e-5), "pi mismatch (f32)"
    assert jnp.allclose(v, v_ref, atol=1e-5, rtol=1e-5), "v mismatch (f32)"

    # --- bf16 weights (v6e/v7x weight-DMA win), multi-step grid + padding --
    params_bf16 = init_params(k_param, input_dims, n_actions,
                              weight_dtype=jnp.bfloat16)
    B2 = 20  # not a multiple of the tile -> exercises batch padding
    state2 = jax.random.normal(k_state2, (B2, input_dims[0]), dtype=jnp.float32)
    pi2, v2 = actor_critic_forward(state2, params_bf16, block_b=8)
    (pi2, v2) = jax.block_until_ready((pi2, v2))
    pi2_ref, v2_ref = reference_forward(state2, params_bf16)
    assert pi2.shape == (B2, n_actions) and v2.shape == (B2, 1)
    assert jnp.allclose(pi2, pi2_ref, atol=1e-2, rtol=1e-2), "pi mismatch (bf16)"
    assert jnp.allclose(v2, v2_ref, atol=1e-2, rtol=1e-2), "v mismatch (bf16)"

    # TODO(synk): Adam optimizer / save_model / load_model are host-side
    # training & I/O concerns, not part of the forward pass, and are not
    # implemented as kernels.
    print("KERNEL_OK")
</pallas_src>

<mosaic_0001>
module attributes {stable_mosaic.version = 11 : i64} {
  func.func @_actor_critic_kernel(%arg0: i32, %arg1: memref<8x16xf32, #tpu.memory_space<vmem>>, %arg2: memref<16x256xf32, #tpu.memory_space<vmem>>, %arg3: memref<1x256xf32, #tpu.memory_space<vmem>>, %arg4: memref<256x256xf32, #tpu.memory_space<vmem>>, %arg5: memref<1x256xf32, #tpu.memory_space<vmem>>, %arg6: memref<256x128xf32, #tpu.memory_space<vmem>>, %arg7: memref<1x128xf32, #tpu.memory_space<vmem>>, %arg8: memref<8x128xf32, #tpu.memory_space<vmem>>) attributes {dimension_semantics = [#tpu.dimension_semantics<parallel>], iteration_bounds = array<i64: 1>, scalar_prefetch = 0 : i64, scratch_operands = 0 : i64, tpu.core_type = #tpu.core_type<tc>, window_params = [{transform_indices = @transform_0, window_bounds = array<i64: 8, 16>}, {pipeline_mode = #tpu.pipeline_mode<synchronous>, transform_indices = @transform_1, window_bounds = array<i64: 16, 256>}, {pipeline_mode = #tpu.pipeline_mode<synchronous>, transform_indices = @transform_2, window_bounds = array<i64: 1, 256>}, {pipeline_mode = #tpu.pipeline_mode<synchronous>, transform_indices = @transform_3, window_bounds = array<i64: 256, 256>}, {pipeline_mode = #tpu.pipeline_mode<synchronous>, transform_indices = @transform_4, window_bounds = array<i64: 1, 256>}, {pipeline_mode = #tpu.pipeline_mode<synchronous>, transform_indices = @transform_5, window_bounds = array<i64: 256, 128>}, {pipeline_mode = #tpu.pipeline_mode<synchronous>, transform_indices = @transform_6, window_bounds = array<i64: 1, 128>}, {transform_indices = @transform_7, window_bounds = array<i64: 8, 128>}]} {
    %c0 = arith.constant 0 : index
    %c0_0 = arith.constant 0 : index
    %0 = vector.load %arg1[%c0, %c0_0] : memref<8x16xf32, #tpu.memory_space<vmem>>, vector<8x16xf32>
    %c0_1 = arith.constant 0 : index
    %c0_2 = arith.constant 0 : index
    %1 = vector.load %arg2[%c0_1, %c0_2] : memref<16x256xf32, #tpu.memory_space<vmem>>, vector<16x256xf32>
    %cst = arith.constant dense<0.000000e+00> : vector<8x256xf32>
    %2 = tpu.matmul %0, %1, %cst {dimension_numbers = #tpu.dot_dimension_numbers<[1], [0], [0], [1], [0, 0, 1, 1], [], []>} : vector<8x16xf32>, vector<16x256xf32>, vector<8x256xf32> -> vector<8x256xf32>
    %c0_3 = arith.constant 0 : index
    %c0_4 = arith.constant 0 : index
    %3 = vector.load %arg3[%c0_3, %c0_4] : memref<1x256xf32, #tpu.memory_space<vmem>>, vector<1x256xf32>
    %4 = vector.broadcast %3 : vector<1x256xf32> to vector<8x256xf32>
    %5 = arith.addf %2, %4 : vector<8x256xf32>
    %cst_5 = arith.constant 0.000000e+00 : f32
    %6 = vector.broadcast %cst_5 : f32 to vector<8x256xf32>
    %7 = arith.maximumf %5, %6 : vector<8x256xf32>
    %c0_6 = arith.constant 0 : index
    %c0_7 = arith.constant 0 : index
    %8 = vector.load %arg4[%c0_6, %c0_7] : memref<256x256xf32, #tpu.memory_space<vmem>>, vector<256x256xf32>
    %cst_8 = arith.constant dense<0.000000e+00> : vector<8x256xf32>
    %9 = tpu.matmul %7, %8, %cst_8 {dimension_numbers = #tpu.dot_dimension_numbers<[1], [0], [0], [1], [0, 0, 1, 1], [], []>} : vector<8x256xf32>, vector<256x256xf32>, vector<8x256xf32> -> vector<8x256xf32>
    %c0_9 = arith.constant 0 : index
    %c0_10 = arith.constant 0 : index
    %10 = vector.load %arg5[%c0_9, %c0_10] : memref<1x256xf32, #tpu.memory_space<vmem>>, vector<1x256xf32>
    %11 = vector.broadcast %10 : vector<1x256xf32> to vector<8x256xf32>
    %12 = arith.addf %9, %11 : vector<8x256xf32>
    %cst_11 = arith.constant 0.000000e+00 : f32
    %13 = vector.broadcast %cst_11 : f32 to vector<8x256xf32>
    %14 = arith.maximumf %12, %13 : vector<8x256xf32>
    %c0_12 = arith.constant 0 : index
    %c0_13 = arith.constant 0 : index
    %15 = vector.load %arg6[%c0_12, %c0_13] : memref<256x128xf32, #tpu.memory_space<vmem>>, vector<256x128xf32>
    %cst_14 = arith.constant dense<0.000000e+00> : vector<8x128xf32>
    %16 = tpu.matmul %14, %15, %cst_14 {dimension_numbers = #tpu.dot_dimension_numbers<[1], [0], [0], [1], [0, 0, 1, 1], [], []>} : vector<8x256xf32>, vector<256x128xf32>, vector<8x128xf32> -> vector<8x128xf32>
    %c0_15 = arith.constant 0 : index
    %c0_16 = arith.constant 0 : index
    %17 = vector.load %arg7[%c0_15, %c0_16] : memref<1x128xf32, #tpu.memory_space<vmem>>, vector<1x128xf32>
    %18 = vector.broadcast %17 : vector<1x128xf32> to vector<8x128xf32>
    %19 = arith.addf %16, %18 : vector<8x128xf32>
    %c0_17 = arith.constant 0 : index
    %c0_18 = arith.constant 0 : index
    %20 = vector.load %arg8[%c0_17, %c0_18] : memref<8x128xf32, #tpu.memory_space<vmem>>, vector<8x128xf32>
    tpu.vector_store %arg8[%c0_17, %c0_18], %19 {strides = array<i32>} : memref<8x128xf32, #tpu.memory_space<vmem>>, vector<8x128xf32>,
    return
  }
  func.func @transform_0(%arg0: i32) -> (i32, i32) {
    %c0_i32 = arith.constant 0 : i32
    %c0_i32_0 = arith.constant 0 : i32
    return %arg0, %c0_i32 : i32, i32
  }
  func.func @transform_1(%arg0: i32) -> (i32, i32) {
    %c0_i32 = arith.constant 0 : i32
    %c0_i32_0 = arith.constant 0 : i32
    %c0_i32_1 = arith.constant 0 : i32
    return %c0_i32, %c0_i32_0 : i32, i32
  }
  func.func @transform_2(%arg0: i32) -> (i32, i32) {
    %c0_i32 = arith.constant 0 : i32
    %c0_i32_0 = arith.constant 0 : i32
    %c0_i32_1 = arith.constant 0 : i32
    return %c0_i32, %c0_i32_0 : i32, i32
  }
  func.func @transform_3(%arg0: i32) -> (i32, i32) {
    %c0_i32 = arith.constant 0 : i32
    %c0_i32_0 = arith.constant 0 : i32
    %c0_i32_1 = arith.constant 0 : i32
    return %c0_i32, %c0_i32_0 : i32, i32
  }
  func.func @transform_4(%arg0: i32) -> (i32, i32) {
    %c0_i32 = arith.constant 0 : i32
    %c0_i32_0 = arith.constant 0 : i32
    %c0_i32_1 = arith.constant 0 : i32
    return %c0_i32, %c0_i32_0 : i32, i32
  }
  func.func @transform_5(%arg0: i32) -> (i32, i32) {
    %c0_i32 = arith.constant 0 : i32
    %c0_i32_0 = arith.constant 0 : i32
    %c0_i32_1 = arith.constant 0 : i32
    return %c0_i32, %c0_i32_0 : i32, i32
  }
  func.func @transform_6(%arg0: i32) -> (i32, i32) {
    %c0_i32 = arith.constant 0 : i32
    %c0_i32_0 = arith.constant 0 : i32
    %c0_i32_1 = arith.constant 0 : i32
    return %c0_i32, %c0_i32_0 : i32, i32
  }
  func.func @transform_7(%arg0: i32) -> (i32, i32) {
    %c0_i32 = arith.constant 0 : i32
    %c0_i32_0 = arith.constant 0 : i32
    return %arg0, %c0_i32 : i32, i32
  }
}

</mosaic_0001>

<bundles_post_ra>
// kernel: actor_critic_forward.1
= control target key start
LH: loop header
LB: loop body
LE: loop exit
PB: predicated region body
PF: predicated region fallthrough
CT: control target
= control target key end

     0   :  { %v521_v3 = vmov 0.0   ;;  %vm43_vm0 = vcmask 130048   ;;  %s877_s1 = inlined_call_operand.vmem [shape: f32[16,256], index: 1, kind: input, shape index: {}]   ;;  %s878_s0 = inlined_call_operand.vmem [shape: f32[8,16], index: 0, kind: input, shape index: {}]   ;;  %s879_s3 = inlined_call_operand.vmem [shape: f32[256,256], index: 3, kind: input, shape index: {}]   ;;  %s880_s5 = inlined_call_operand.vmem [shape: f32[256,128], index: 5, kind: input, shape index: {}]   ;;  %s881_s2 = inlined_call_operand.vmem [shape: f32[1,256], index: 2, kind: input, shape index: {}]   ;;  %s882_s4 = inlined_call_operand.vmem [shape: f32[1,256], index: 4, kind: input, shape index: {}]   ;;  %s883_s6 = inlined_call_operand.vmem [shape: f32[1,128], index: 6, kind: input, shape index: {}]   ;;  %s884_s7 = inlined_call_operand.vmem [shape: f32[8,128], index: 7, kind: output, shape index: {}]  }
   0x1   :  { %v28_v0 = vld [vmem:[%s877_s1 + $0x8] sm:$0xff]  ;;  %v30_v1 = vld [vmem:[%s877_s1 + $0x18] sm:$0xff]  ;;  %v27_v2 = vld [vmem:[%s877_s1] sm:$0xff]  ;;  %111 = vmatprep.mubr.f32.mxu0 %v521_v3 }
   0x2   :  { %v420_v4 = vpack.c.bf16 %v30_v1, %v28_v0  ;;  %v29_v5 = vld [vmem:[%s877_s1 + $0x10] sm:$0xff]  ;;  %v121_v6 = vld [vmem:[%s879_s3 + $0x8] sm:$0xff]  ;;  %v26_v8 = vld [vmem:[%s878_s0] sm:$0xff] }
   0x3   :  { %v422_v7 = vpack.c.bf16 %v29_v5, %v27_v2  ;;  %v123_v9 = vld [vmem:[%s879_s3 + $0x18] sm:$0xff]  ;;  %v120_v10 = vld [vmem:[%s879_s3] sm:$0xff]  ;;  %v122_v11 = vld [vmem:[%s879_s3 + $0x10] sm:$0xff] }
   0x4   :  { %421 = vmatprep.subr.bf16.mxu0 %v420_v4  ;;  %v424_v12 = vpack.c.bf16 %v123_v9, %v121_v6  ;;  %v426_v13 = vpack.c.bf16 %v122_v11, %v120_v10  ;;  %v125_v14 = vld [vmem:[%s879_s3 + $0x28] sm:$0xff]  ;;  %v127_v15 = vld [vmem:[%s879_s3 + $0x38] sm:$0xff]  ;;  %v124_v16 = vld [vmem:[%s879_s3 + $0x20] sm:$0xff] }
   0x5   :  { %423 = vmatpush1.bf16.msra.mxu0 %v422_v7  ;;  %v428_v17 = vpack.c.bf16 %v127_v15, %v125_v14  ;;  %v126_v18 = vld [vmem:[%s879_s3 + $0x30] sm:$0xff]  ;;  %v129_v19 = vld [vmem:[%s879_s3 + $0x48] sm:$0xff]  ;;  %v131_v20 = vld [vmem:[%s879_s3 + $0x58] sm:$0xff] }
   0x6   :  { %425 = vmatprep.subr.bf16.mxu1 %v424_v12  ;;  %v430_v21 = vpack.c.bf16 %v126_v18, %v124_v16  ;;  %v432_v22 = vpack.c.bf16 %v131_v20, %v129_v19  ;;  %v128_v23 = vld [vmem:[%s879_s3 + $0x40] sm:$0xff]  ;;  %v130_v24 = vld [vmem:[%s879_s3 + $0x50] sm:$0xff]  ;;  %v133_v25 = vld [vmem:[%s879_s3 + $0x68] sm:$0xff] }
   0x7   :  { %427 = vmatpush1.bf16.msra.mxu1 %v426_v13  ;;  %v135_v26 = vld [vmem:[%s879_s3 + $0x78] sm:$0xff]  ;;  %v434_v27 = vpack.c.bf16 %v130_v24, %v128_v23  ;;  %v132_v29 = vld [vmem:[%s879_s3 + $0x60] sm:$0xff]  ;;  %v134_v30 = vld [vmem:[%s879_s3 + $0x70] sm:$0xff] }
   0x8   :  { %383 = vmatmul.mubr.msk.f32.vlgmr.msra.gmra.mrb[0].mxu0 %vm43_vm0, %v26_v8  ;;  %429 = vmatprep.subr.bf16.mxu1 %v428_v17  ;;  %v436_v28 = vpack.c.bf16 %v135_v26, %v133_v25  ;;  %v137_v31 = vld [vmem:[%s879_s3 + $0x88] sm:$0xff]  ;;  %v139_v32 = vld [vmem:[%s879_s3 + $0x98] sm:$0xff]  ;;  %v438_v33 = vpack.c.bf16 %v134_v30, %v132_v29  ;;  %v136_v35 = vld [vmem:[%s879_s3 + $0x80] sm:$0xff] }
   0x9   :  { %v440_v34 = vpack.c.bf16 %v139_v32, %v137_v31  ;;  %v138_v36 = vld [vmem:[%s879_s3 + $0x90] sm:$0xff]  ;;  %v141_v37 = vld [vmem:[%s879_s3 + $0xa8] sm:$0xff]  ;;  %v143_v38 = vld [vmem:[%s879_s3 + $0xb8] sm:$0xff] }
   0xa   :  { %v442_v39 = vpack.c.bf16 %v138_v36, %v136_v35  ;;  %v444_v40 = vpack.c.bf16 %v143_v38, %v141_v37  ;;  %v140_v41 = vld [vmem:[%s879_s3 + $0xa0] sm:$0xff]  ;;  %v142_v42 = vld [vmem:[%s879_s3 + $0xb0] sm:$0xff]  ;;  %v145_v43 = vld [vmem:[%s879_s3 + $0xc8] sm:$0xff] }
   0xb   :  { %431 = vmatpush1.bf16.msra.mxu1 %v430_v21  ;;  %v147_v44 = vld [vmem:[%s879_s3 + $0xd8] sm:$0xff]  ;;  %v446_v45 = vpack.c.bf16 %v142_v42, %v140_v41  ;;  %v144_v47 = vld [vmem:[%s879_s3 + $0xc0] sm:$0xff]  ;;  %v146_v48 = vld [vmem:[%s879_s3 + $0xd0] sm:$0xff] }
   0xc   :  { %433 = vmatprep.subr.bf16.mxu1 %v432_v22  ;;  %v448_v46 = vpack.c.bf16 %v147_v44, %v145_v43  ;;  %v149_v49 = vld [vmem:[%s879_s3 + $0xe8] sm:$0xff]  ;;  %v151_v50 = vld [vmem:[%s879_s3 + $0xf8] sm:$0xff]  ;;  %v450_v51 = vpack.c.bf16 %v146_v48, %v144_v47  ;;  %v148_v53 = vld [vmem:[%s879_s3 + $0xe0] sm:$0xff] }
   0xd   :  { %v452_v52 = vpack.c.bf16 %v151_v50, %v149_v49  ;;  %v150_v54 = vld [vmem:[%s879_s3 + $0xf0] sm:$0xff]  ;;  %v153_v55 = vld [vmem:[%s879_s3 + $0x108] sm:$0xff]  ;;  %v155_v56 = vld [vmem:[%s879_s3 + $0x118] sm:$0xff] }
   0xe   :  { %v454_v57 = vpack.c.bf16 %v150_v54, %v148_v53  ;;  %v456_v58 = vpack.c.bf16 %v155_v56, %v153_v55  ;;  %v152_v59 = vld [vmem:[%s879_s3 + $0x100] sm:$0xff]  ;;  %v154_v60 = vld [vmem:[%s879_s3 + $0x110] sm:$0xff]  ;;  %v157_v61 = vld [vmem:[%s879_s3 + $0x128] sm:$0xff] }
   0xf   :  { %435 = vmatpush1.bf16.msra.mxu1 %v434_v27  ;;  %v159_v62 = vld [vmem:[%s879_s3 + $0x138] sm:$0xff]  ;;  %v458_v63 = vpack.c.bf16 %v154_v60, %v152_v59  ;;  %v156_v1 = vld [vmem:[%s879_s3 + $0x120] sm:$0xff]  ;;  %v158_v2 = vld [vmem:[%s879_s3 + $0x130] sm:$0xff] }
  0x10   :  { %437 = vmatprep.subr.bf16.mxu1 %v436_v28  ;;  %v460_v0 = vpack.c.bf16 %v159_v62, %v157_v61  ;;  %v161_v3 = vld [vmem:[%s879_s3 + $0x148] sm:$0xff]  ;;  %v163_v4 = vld [vmem:[%s879_s3 + $0x158] sm:$0xff]  ;;  %v462_v5 = vpack.c.bf16 %v158_v2, %v156_v1  ;;  %v160_v7 = vld [vmem:[%s879_s3 + $0x140] sm:$0xff] }
  0x11   :  { %v464_v6 = vpack.c.bf16 %v163_v4, %v161_v3  ;;  %v162_v8 = vld [vmem:[%s879_s3 + $0x150] sm:$0xff]  ;;  %v165_v9 = vld [vmem:[%s879_s3 + $0x168] sm:$0xff]  ;;  %v167_v10 = vld [vmem:[%s879_s3 + $0x178] sm:$0xff] }
  0x12   :  { %v466_v11 = vpack.c.bf16 %v162_v8, %v160_v7  ;;  %v468_v12 = vpack.c.bf16 %v167_v10, %v165_v9  ;;  %v164_v13 = vld [vmem:[%s879_s3 + $0x160] sm:$0xff]  ;;  %v166_v14 = vld [vmem:[%s879_s3 + $0x170] sm:$0xff]  ;;  %v169_v15 = vld [vmem:[%s879_s3 + $0x188] sm:$0xff] }
  0x13   :  { %439 = vmatpush1.bf16.msra.mxu1 %v438_v33  ;;  %v171_v16 = vld [vmem:[%s879_s3 + $0x198] sm:$0xff]  ;;  %v470_v17 = vpack.c.bf16 %v166_v14, %v164_v13  ;;  %v168_v19 = vld [vmem:[%s879_s3 + $0x180] sm:$0xff]  ;;  %v170_v20 = vld [vmem:[%s879_s3 + $0x190] sm:$0xff] }
  0x14   :  { %441 = vmatprep.subr.bf16.mxu1 %v440_v34  ;;  %v472_v18 = vpack.c.bf16 %v171_v16, %v169_v15  ;;  %v173_v21 = vld [vmem:[%s879_s3 + $0x1a8] sm:$0xff]  ;;  %v175_v22 = vld [vmem:[%s879_s3 + $0x1b8] sm:$0xff]  ;;  %v474_v23 = vpack.c.bf16 %v170_v20, %v168_v19  ;;  %v172_v25 = vld [vmem:[%s879_s3 + $0x1a0] sm:$0xff]  ;;  %v33_v15 = vlaneseq }
  0x15   :  { %v476_v24 = vpack.c.bf16 %v175_v22, %v173_v21  ;;  %v174_v26 = vld [vmem:[%s879_s3 + $0x1b0] sm:$0xff]  ;;  %v177_v27 = vld [vmem:[%s879_s3 + $0x1c8] sm:$0xff]  ;;  %v179_v28 = vld [vmem:[%s879_s3 + $0x1d8] sm:$0xff] }
  0x16   :  { %v478_v29 = vpack.c.bf16 %v174_v26, %v172_v25  ;;  %v480_v30 = vpack.c.bf16 %v179_v28, %v177_v27  ;;  %v176_v31 = vld [vmem:[%s879_s3 + $0x1c0] sm:$0xff]  ;;  %v178_v32 = vld [vmem:[%s879_s3 + $0x1d0] sm:$0xff]  ;;  %v181_v34 = vld [vmem:[%s879_s3 + $0x1e8] sm:$0xff]  ;;  %v34_v16 = vshrl.u32 %v33_v15, 7 }
  0x17   :  { %443 = vmatpush1.bf16.msra.mxu1 %v442_v39  ;;  %v482_v33 = vpack.c.bf16 %v178_v32, %v176_v31  ;;  %v183_v35 = vld [vmem:[%s879_s3 + $0x1f8] sm:$0xff]  ;;  %v180_v37 = vld [vmem:[%s879_s3 + $0x1e0] sm:$0xff]  ;;  %v182_v38 = vld [vmem:[%s879_s3 + $0x1f0] sm:$0xff] }
  0x18   :  { %445 = vmatprep.subr.bf16.mxu1 %v444_v40  ;;  %v484_v36 = vpack.c.bf16 %v183_v35, %v181_v34  ;;  %v486_v39 = vpack.c.bf16 %v182_v38, %v180_v37  ;;  %v285_v40 = vld [vmem:[%s880_s5 + $0x80] sm:$0xff]  ;;  %v286_v41 = vld [vmem:[%s880_s5 + $0x88] sm:$0xff]  ;;  %v271_v49 = vld [vmem:[%s880_s5 + $0x10] sm:$0xff]  ;;  %v39_v19 = vsub.s32 1, %v34_v16 }
  0x19   :  { %v269_v42 = vld [vmem:[%s880_s5] sm:$0xff]  ;;  %v488_v43 = vpack.c.bf16 %v286_v41, %v285_v40  ;;  %v270_v44 = vld [vmem:[%s880_s5 + $0x8] sm:$0xff]  ;;  %v272_v50 = vld [vmem:[%s880_s5 + $0x18] sm:$0xff] }
  0x1a   :  { %v490_v47 = vpack.c.bf16 %v270_v44, %v269_v42  ;;  %v494_v53 = vpack.c.bf16 %v272_v50, %v271_v49  ;;  %v273_v55 = vld [vmem:[%s880_s5 + $0x20] sm:$0xff]  ;;  %v274_v56 = vld [vmem:[%s880_s5 + $0x28] sm:$0xff]  ;;  %v275_v61 = vld [vmem:[%s880_s5 + $0x30] sm:$0xff] }
  0x1b   :  { %447 = vmatpush1.bf16.msra.mxu1 %v446_v45  ;;  %v287_v45 = vld [vmem:[%s880_s5 + $0x90] sm:$0xff]  ;;  %489 = vmatprep.subr.bf16.mxu0 %v488_v43  ;;  %v498_v59 = vpack.c.bf16 %v274_v56, %v273_v55  ;;  %v276_v62 = vld [vmem:[%s880_s5 + $0x38] sm:$0xff]  ;;  %v277_v3 = vld [vmem:[%s880_s5 + $0x40] sm:$0xff] }
  0x1c   :  { %449 = vmatprep.subr.bf16.mxu1 %v448_v46  ;;  %v288_v46 = vld [vmem:[%s880_s5 + $0x98] sm:$0xff]  ;;  %491 = vmatpush3.bf16.msra.mxu0 %v490_v47  ;;  %v502_v1 = vpack.c.bf16 %v276_v62, %v275_v61  ;;  %v278_v4 = vld [vmem:[%s880_s5 + $0x48] sm:$0xff]  ;;  %v279_v9 = vld [vmem:[%s880_s5 + $0x50] sm:$0xff] }
  0x1d   :  { %v492_v48 = vpack.c.bf16 %v288_v46, %v287_v45  ;;  %v506_v7 = vpack.c.bf16 %v278_v4, %v277_v3  ;;  %v280_v10 = vld [vmem:[%s880_s5 + $0x58] sm:$0xff]  ;;  %v281_v28 = vld [vmem:[%s880_s5 + $0x60] sm:$0xff]  ;;  %v299_v31 = vld [vmem:[%s880_s5 + $0xf0] sm:$0xff] }
  0x1e   :  { %v510_v13 = vpack.c.bf16 %v280_v10, %v279_v9  ;;  %v300_v32 = vld [vmem:[%s880_s5 + $0xf8] sm:$0xff]  ;;  %v283_v34 = vld [vmem:[%s880_s5 + $0x70] sm:$0xff]  ;;  %v184_v37 = vld [vmem:[%s882_s4] sm:$0x3] }
  0x1f   :  { %451 = vmatpush1.bf16.msra.mxu1 %v450_v51  ;;  %v289_v51 = vld [vmem:[%s880_s5 + $0xa0] sm:$0xff]  ;;  %493 = vmatprep.subr.bf16.mxu0 %v492_v48  ;;  %v284_v35 = vld [vmem:[%s880_s5 + $0x78] sm:$0xff] }
  0x20   :  { %453 = vmatprep.subr.bf16.mxu1 %v452_v52  ;;  %v290_v52 = vld [vmem:[%s880_s5 + $0xa8] sm:$0xff]  ;;  %495 = vmatpush3.bf16.msra.mxu0 %v494_v53  ;;  %v384_v47 = vld [vmem:[%s883_s6] ss:$0 sm:$0xff] }
  0x21   :  { %v496_v54 = vpack.c.bf16 %v290_v52, %v289_v51 }
  0x23   :  { %455 = vmatpush1.bf16.msra.mxu1 %v454_v57  ;;  %v291_v57 = vld [vmem:[%s880_s5 + $0xb0] sm:$0xff]  ;;  %497 = vmatprep.subr.bf16.mxu0 %v496_v54 }
  0x24   :  { %457 = vmatprep.subr.bf16.mxu1 %v456_v58  ;;  %v292_v58 = vld [vmem:[%s880_s5 + $0xb8] sm:$0xff]  ;;  %499 = vmatpush3.bf16.msra.mxu0 %v498_v59 }
  0x25   :  { %v500_v60 = vpack.c.bf16 %v292_v58, %v291_v57 }
  0x27   :  { %459 = vmatpush1.bf16.msra.mxu1 %v458_v63  ;;  %v293_v63 = vld [vmem:[%s880_s5 + $0xc0] sm:$0xff]  ;;  %501 = vmatprep.subr.bf16.mxu0 %v500_v60 }
  0x28   :  { %461 = vmatprep.subr.bf16.mxu1 %v460_v0  ;;  %v294_v0 = vld [vmem:[%s880_s5 + $0xc8] sm:$0xff]  ;;  %503 = vmatpush3.bf16.msra.mxu0 %v502_v1 }
  0x29   :  { %v504_v2 = vpack.c.bf16 %v294_v0, %v293_v63 }
  0x2b   :  { %463 = vmatpush1.bf16.msra.mxu1 %v462_v5  ;;  %v295_v5 = vld [vmem:[%s880_s5 + $0xd0] sm:$0xff]  ;;  %505 = vmatprep.subr.bf16.mxu0 %v504_v2 }
  0x2c   :  { %465 = vmatprep.subr.bf16.mxu1 %v464_v6  ;;  %v296_v6 = vld [vmem:[%s880_s5 + $0xd8] sm:$0xff]  ;;  %507 = vmatpush3.bf16.msra.mxu0 %v506_v7 }
  0x2d   :  { %v508_v8 = vpack.c.bf16 %v296_v6, %v295_v5 }
  0x2f   :  { %467 = vmatpush1.bf16.msra.mxu1 %v466_v11  ;;  %v297_v11 = vld [vmem:[%s880_s5 + $0xe0] sm:$0xff]  ;;  %509 = vmatprep.subr.bf16.mxu0 %v508_v8 }
  0x30   :  { %469 = vmatprep.subr.bf16.mxu1 %v468_v12  ;;  %v298_v12 = vld [vmem:[%s880_s5 + $0xe8] sm:$0xff]  ;;  %511 = vmatpush3.bf16.msra.mxu0 %v510_v13 }
  0x31   :  { %v512_v14 = vpack.c.bf16 %v298_v12, %v297_v11 }
  0x33   :  { %471 = vmatpush1.bf16.msra.mxu1 %v470_v17  ;;  %513 = vmatprep.subr.bf16.mxu0 %v512_v14  ;;  %v35_v17 = vsub.s32 0, %v34_v16 }
  0x34   :  { %473 = vmatprep.subr.bf16.mxu1 %v472_v18  ;;  %v31_v18 = vld [vmem:[%s881_s2] sm:$0x3] }
  0x35   :  { %v36_v20 = vrot.slane %v31_v18, %v35_v17  ;;  %v40_v21 = vrot.slane %v31_v18, %v39_v19  ;;  %v189_v38 = vrot.slane %v184_v37, %v35_v17 }
  0x37   :  { %475 = vmatpush1.bf16.msra.mxu1 %v474_v23 }
  0x38   :  { %477 = vmatprep.subr.bf16.mxu1 %v476_v24 }
  0x3b   :  { %479 = vmatpush1.bf16.msra.mxu1 %v478_v29  ;;  %v282_v29 = vld [vmem:[%s880_s5 + $0x68] sm:$0xff] }
  0x3c   :  { %481 = vmatprep.subr.bf16.mxu1 %v480_v30  ;;  %v514_v30 = vpack.c.bf16 %v282_v29, %v281_v28 }
  0x3e   :  { %515 = vmatpush3.bf16.msra.mxu0 %v514_v30 }
  0x3f   :  { %483 = vmatpush1.bf16.msra.mxu1 %v482_v33  ;;  %v516_v33 = vpack.c.bf16 %v300_v32, %v299_v31 }
  0x40   :  { %485 = vmatprep.subr.bf16.mxu1 %v484_v36  ;;  %v518_v36 = vpack.c.bf16 %v284_v35, %v283_v34 }
  0x41   :  { %517 = vmatprep.subr.bf16.mxu0 %v516_v33 }
  0x42   :  { %519 = vmatpush3.bf16.msra.mxu0 %v518_v36 }
  0x43   :  { %487 = vmatpush1.bf16.msra.mxu1 %v486_v39  ;;  %v193_v39 = vrot.slane %v184_v37, %v39_v19 }
  0xdb   :  { %v113_v22 = vpop.f32.mrb[0].mxu0 }
  0xdc   :  { %v114_v23 = vadd.f32 %v113_v22, %v36_v20  ;;  %v115_v24 = vpop.f32.mrb[1].mxu0 }
  0xdd   :  { %v116_v25 = vadd.f32 %v115_v24, %v40_v21 }
  0xde   :  { %v118_v27 = vmax.f32 %v114_v23, 0.0 }
  0xdf   :  { %v119_v26 = vmax.f32 %v116_v25, 0.0 }
  0xe1   :  { %260 = vmatprep.mubr.f32.mxu1 %v119_v26 }
  0xe2   :  { %261 = vmatmul.mubr.f32.vlgmr.msra.gmra.mrb[0].mxu1 %v118_v27 }
 0x1b5   :  { %v262_v40 = vpop.f32.mrb[0].mxu1 }
 0x1b6   :  { %v263_v41 = vadd.f32 %v262_v40, %v189_v38  ;;  %v264_v42 = vpop.f32.mrb[1].mxu1 }
 0x1b7   :  { %v265_v43 = vadd.f32 %v264_v42, %v193_v39 }
 0x1b8   :  { %v267_v45 = vmax.f32 %v263_v41, 0.0 }
 0x1b9   :  { %v268_v44 = vmax.f32 %v265_v43, 0.0 }
 0x1bb   :  { %372 = vmatprep.mubr.f32.mxu0 %v268_v44 }
 0x1bc   :  { %373 = vmatmul.mubr.f32.vlgmr.msra.gmra.mrb[2].mxu0 %v267_v45 }
 0x28f   :  { %v417_v46 = vpop.f32.mrb[2].mxu0 }
 0x290   :  { %v418_v48 = vpop.f32.mrb[3].mxu0 }
 0x291   :  { %v419_v49 = vadd.f32 %v418_v48, %v417_v46 }
 0x293   :  { %v375_v50 = vadd.f32 %v419_v49, %v384_v47 }
 0x295   :  { %378 = vst [vmem:[%s884_s7] sm:$0xff] %v375_v50 }

</bundles_post_ra>
